<compile_context>
chip_gen: v7x
topology: tpu7x:2x2x1
jax: 0.10.0
libtpu: 0.0.40
codegen_flags: <defaults>
</compile_context>

<pallas_src>
import functools

import jax
import jax.numpy as jnp
from jax.experimental import pallas as pl
from jax.experimental.pallas import tpu as pltpu


def _cdiv(a, b):
    return -(-a // b)


def _round_up(a, b):
    return _cdiv(a, b) * b


def _vmem_capacity_bytes():
    try:
        return int(pltpu.get_tpu_info().vmem_capacity_bytes)
    except Exception:  # query unavailable (e.g. interpret mode): be conservative
        return 64 * 1024 * 1024  # v7x per-TC capacity


def _choose_tiling(rows, lane_width, itemsize):
    """Pick (tile_rows, num_tiles, vmem_limit_bytes) for a (rows, lane_width) slab."""
    # Packed-sublane minimum: 8 for 4-byte, 16 for 2-byte, 32 for 1-byte dtypes.
    sublane = max(8, 32 // itemsize)
    vmem_cap = _vmem_capacity_bytes()

    # Auto-pipelining double-buffers input and output: ~4x tile bytes resident.
    # Keep a single tile under min(8 MiB, vmem_cap/8) so v7x (64 MiB) fits too.
    tile_bytes_cap = min(8 * 1024 * 1024, vmem_cap // 8)
    max_tile_rows = max(
        sublane, (tile_bytes_cap // (lane_width * itemsize)) // sublane * sublane)

    if rows < 2 * sublane:
        # Too small to split usefully; full-extent block is legal regardless of
        # the (8,128) divisibility rule.
        tile_rows, num_tiles = rows, 1
    elif _round_up(_cdiv(rows, 2), sublane) <= max_tile_rows:
        # Two balanced tiles: both v7x TensorCores busy, minimal per-step overhead.
        tile_rows = _round_up(_cdiv(rows, 2), sublane)
        num_tiles = _cdiv(rows, tile_rows)
    else:
        tile_rows = max_tile_rows
        num_tiles = _cdiv(rows, tile_rows)
        if num_tiles % 2:  # v7x megacore: prefer an even tile count when cheap.
            alt = _round_up(_cdiv(rows, num_tiles + 1), sublane)
            if alt >= sublane:
                tile_rows = alt
                num_tiles = _cdiv(rows, tile_rows)

    # Raise v5e's 16 MiB scoped default; stay ~25% under physical capacity
    # (=> ~96 MiB on v5e/v6e, ~48 MiB on v7x).
    vmem_limit = int(min(100 * 1024 * 1024, (vmem_cap * 3) // 4))
    return tile_rows, num_tiles, vmem_limit


def _elementwise_slab(x2d, func, *, alias_input):
    """Apply `func` elementwise to a lane-dense (rows, lane_width) slab."""
    rows, lane_width = x2d.shape
    itemsize = jnp.dtype(x2d.dtype).itemsize
    tile_rows, num_tiles, vmem_limit = _choose_tiling(rows, lane_width, itemsize)

    def kernel(x_ref, o_ref):
        o_ref[...] = func(x_ref[...]).astype(o_ref.dtype)

    n_elems = rows * lane_width
    cost = pl.CostEstimate(
        flops=4 * n_elems,            # ~a few VPU ops per element
        transcendentals=n_elems,      # sigmoid exp on the EUP
        bytes_accessed=2 * n_elems * itemsize,
    )

    return pl.pallas_call(
        kernel,
        out_shape=jax.ShapeDtypeStruct((rows, lane_width), x2d.dtype),
        grid_spec=pltpu.PrefetchScalarGridSpec(
            num_scalar_prefetch=0,
            grid=(num_tiles,),
            in_specs=[pl.BlockSpec((tile_rows, lane_width), lambda i: (i, 0))],
            out_specs=pl.BlockSpec((tile_rows, lane_width), lambda i: (i, 0)),
        ),
        compiler_params=pltpu.CompilerParams(
            dimension_semantics=("parallel",),
            vmem_limit_bytes=vmem_limit,
        ),
        cost_estimate=cost,
        # Only alias when the input is a fresh intermediate (never a view of
        # the caller's buffer), so no clobber and no hidden defensive copy.
        input_output_aliases=({0: 0} if alias_input else {}),
    )(x2d)


@functools.partial(jax.jit, static_argnums=(1,))
def lambda_forward(x, func):
    """Pallas implementation of Lambda(func)(x) for an elementwise `func`.

    x: jnp array of any shape (e.g. NCHW, matching the PyTorch module).
    func: elementwise jnp-composable callable (held statically, like the
          module's self.func).
    """
    orig_shape = x.shape
    total = 1
    for d in orig_shape:
        total *= int(d)
    if total == 0:
        return x

    # Widest lane-dense width that divides the flat length exactly, so the
    # common case needs no padding and no wrapper copies at all.
    lane_width = next((w for w in (512, 256, 128) if total % w == 0), 128)

    x_flat = x.reshape(-1)                      # contiguous reshape: free under jit
    bulk = (total // lane_width) * lane_width

    if bulk == 0:
        # TODO(synk): inputs smaller than one 128-lane vreg row go through plain
        # jnp — a Pallas launch would be pure overhead for < 128 elements.
        return func(x)

    if bulk == total:
        # Zero-copy path: the slab is a bitcast view of the caller's x, so do
        # NOT alias it with the output.
        y2d = _elementwise_slab(x_flat.reshape(-1, lane_width), func,
                                alias_input=False)
        return y2d.reshape(orig_shape)

    # Ragged tail (< lane_width elements): kernel over the bulk only, tiny tail
    # with plain jnp — no full-array pad / output-slice passes.
    x_bulk = x_flat[:bulk].reshape(-1, lane_width)   # fresh buffer -> safe to alias
    y_bulk = _elementwise_slab(x_bulk, func, alias_input=True).reshape(-1)
    y_tail = func(x_flat[bulk:])
    return jnp.concatenate([y_bulk, y_tail]).reshape(orig_shape)


if __name__ == "__main__":
    # Concrete func the Lambda wraps (SiLU).  The module's __init__ holds only
    # the callable — there are no parameters to initialize.
    func = lambda t: t * jax.nn.sigmoid(t)

    # 1) Small NCHW input consistent with a conv-style feature map (no-pad path).
    x = jax.random.normal(jax.random.PRNGKey(0), (2, 4, 16, 16), dtype=jnp.float32)
    y = jax.block_until_ready(lambda_forward(x, func))
    assert y.shape == x.shape and y.dtype == x.dtype
    assert jnp.allclose(y, func(x), atol=1e-6, rtol=1e-6)

    # 2) Awkward shape (odd channels, non-128-multiple length): bulk kernel +
    #    plain-jnp tail, exercising the ragged path without any full-array pad.
    x2 = jax.random.normal(jax.random.PRNGKey(1), (1, 3, 14, 14), dtype=jnp.float32)
    y2 = jax.block_until_ready(lambda_forward(x2, func))
    assert y2.shape == x2.shape and y2.dtype == x2.dtype
    assert jnp.allclose(y2, func(x2), atol=1e-6, rtol=1e-6)

    # 3) Larger feature map exercising a 2-tile grid with a ragged final row
    #    block (masked by Pallas, no padding materialized).
    x3 = jax.random.normal(jax.random.PRNGKey(2), (2, 8, 56, 56), dtype=jnp.float32)
    y3 = jax.block_until_ready(lambda_forward(x3, func))
    assert y3.shape == x3.shape and y3.dtype == x3.dtype
    assert jnp.allclose(y3, func(x3), atol=1e-6, rtol=1e-6)

    print("KERNEL_OK")
</pallas_src>

<mosaic_0001>
module attributes {stable_mosaic.version = 11 : i64} {
  func.func @kernel(%arg0: i32, %arg1: memref<4x512xf32, #tpu.memory_space<vmem>>, %arg2: memref<4x512xf32, #tpu.memory_space<vmem>>) attributes {dimension_semantics = [#tpu.dimension_semantics<parallel>], iteration_bounds = array<i64: 1>, scalar_prefetch = 0 : i64, scratch_operands = 0 : i64, tpu.core_type = #tpu.core_type<tc>, window_params = [{transform_indices = @transform_0, window_bounds = array<i64: 4, 512>}, {transform_indices = @transform_1, window_bounds = array<i64: 4, 512>}]} {
    %c0 = arith.constant 0 : index
    %c0_0 = arith.constant 0 : index
    %0 = vector.load %arg1[%c0, %c0_0] : memref<4x512xf32, #tpu.memory_space<vmem>>, vector<4x512xf32>
    %1 = arith.negf %0 : vector<4x512xf32>
    %2 = math.exp %1 : vector<4x512xf32>
    %cst = arith.constant 1.000000e+00 : f32
    %3 = vector.broadcast %cst : f32 to vector<4x512xf32>
    %4 = arith.addf %3, %2 : vector<4x512xf32>
    %5 = arith.divf %3, %4 : vector<4x512xf32>
    %6 = arith.mulf %0, %5 : vector<4x512xf32>
    %c0_1 = arith.constant 0 : index
    %c0_2 = arith.constant 0 : index
    %7 = vector.load %arg2[%c0_1, %c0_2] : memref<4x512xf32, #tpu.memory_space<vmem>>, vector<4x512xf32>
    tpu.vector_store %arg2[%c0_1, %c0_2], %6 {strides = array<i32>} : memref<4x512xf32, #tpu.memory_space<vmem>>, vector<4x512xf32>,
    return
  }
  func.func @transform_0(%arg0: i32) -> (i32, i32) {
    %c0_i32 = arith.constant 0 : i32
    %c0_i32_0 = arith.constant 0 : i32
    return %arg0, %c0_i32 : i32, i32
  }
  func.func @transform_1(%arg0: i32) -> (i32, i32) {
    %c0_i32 = arith.constant 0 : i32
    %c0_i32_0 = arith.constant 0 : i32
    return %arg0, %c0_i32 : i32, i32
  }
}

</mosaic_0001>

<bundles_post_ra>
// kernel: lambda_forward.1
= control target key start
LH: loop header
LB: loop body
LE: loop exit
PB: predicated region body
PF: predicated region fallthrough
CT: control target
= control target key end

     0   :  { %s62_s0 = inlined_call_operand.vmem [shape: f32[4,512], index: 0, kind: input, shape index: {}]   ;;  %s63_s1 = inlined_call_operand.vmem [shape: f32[4,512], index: 1, kind: output, shape index: {}]  }
   0x1   :  { %v8_v0 = vld [vmem:[%s62_s0] sm:$0xff]  ;;  %v9_v1 = vld [vmem:[%s62_s0 + $0x8] sm:$0xff] }
   0x2   :  { %v30_v2 = vmul.f32 -1.442695, %v8_v0  ;;  %v31_v3 = vmul.f32 -1.442695, %v9_v1 }
   0x4   :  { %32 = vpow2.f32 %v30_v2 }
   0x5   :  { %34 = vpow2.f32 %v31_v3 }
   0xe   :  { %v33_v4 = vpop.eup %32 }
   0xf   :  { %v35_v5 = vpop.eup %34  ;;  %v16_v6 = vadd.f32 1.0, %v33_v4 }
  0x10   :  { %v17_v7 = vadd.f32 1.0, %v35_v5 }
  0x11   :  { %36 = vrcp.f32 %v16_v6 }
  0x12   :  { %38 = vrcp.f32 %v17_v7 }
  0x1b   :  { %v37_v8 = vpop.eup %36 }
  0x1c   :  { %v39_v9 = vpop.eup %38  ;;  %v22_v10 = vmul.f32 %v37_v8, %v8_v0 }
  0x1d   :  { %v23_v11 = vmul.f32 %v39_v9, %v9_v1 }
  0x1e   :  { %24 = vst [vmem:[%s63_s1] sm:$0xff] %v22_v10 }
  0x1f   :  { %25 = vst [vmem:[%s63_s1 + $0x8] sm:$0xff] %v23_v11 }

</bundles_post_ra>
